<compile_context>
chip_gen: v5e
topology: v5e:2x2
jax: 0.10.0
libtpu: 0.0.40
codegen_flags: <defaults>
</compile_context>

<pallas_src>
import jax
import jax.numpy as jnp
from jax.experimental import pallas as pl
from jax.experimental.pallas import tpu as pltpu


def _mlp_kernel(x_ref, w1_ref, b1_ref, w2_ref, b2_ref, o_ref):
    """One batch tile: logits = relu(x @ W1 + b1) . w2 + b2."""
    # layer1 on the MXU: bf16 inputs, f32 accumulation.
    x_bf16 = x_ref[...].astype(jnp.bfloat16)
    w1_bf16 = w1_ref[...].astype(jnp.bfloat16)
    h = jnp.dot(x_bf16, w1_bf16, preferred_element_type=jnp.float32)   # [TB, H]
    # bias + ReLU in f32 on the VPU (valid on v5e too: no bf16 elementwise path).
    h = jnp.maximum(h + b1_ref[...], 0.0)
    # dropout(p=0.3): identity in eval / deterministic forward.
    # TODO(synk): training-mode dropout (random mask + 1/(1-p) scale) is not implemented.
    # layer_out: degenerate [TB,H]@[H,1] matmul -> VPU multiply + lane reduction.
    logits = jnp.sum(h * w2_ref[...], axis=-1, keepdims=True)          # [TB, 1]
    o_ref[...] = (logits + b2_ref[0]).astype(o_ref.dtype)


def binary_mlp_1l_forward(x, w1, b1, w2, b2, *, block_b=512):
    """BinaryMLP1L forward. x: [B, D_in] f32 -> logits [B, 1] f32."""
    B, D_in = x.shape
    H = w1.shape[1]
    assert w1.shape == (D_in, H)
    assert w2.reshape(-1).shape == (H,)

    # Batch tile: whole batch if it is small; otherwise block_b-row tiles
    # (block_b is a multiple of 8 sublanes and 128 lanes), with zero padding
    # of the trailing partial tile.
    if B <= block_b:
        tb = B
        b_pad = B
    else:
        tb = block_b
        b_pad = pl.cdiv(B, tb) * tb
    grid = (b_pad // tb,)

    x_p = x if b_pad == B else jnp.pad(x, ((0, b_pad - B), (0, 0)))

    b1_row = b1.reshape(1, H).astype(jnp.float32)
    w2_row = w2.reshape(1, H).astype(jnp.float32)    # row vector for the VPU path
    b2_sc = b2.reshape(1).astype(jnp.float32)        # scalar -> SMEM

    out = pl.pallas_call(
        _mlp_kernel,
        out_shape=jax.ShapeDtypeStruct((b_pad, 1), jnp.float32),
        grid=grid,
        in_specs=[
            pl.BlockSpec((tb, D_in), lambda i: (i, 0)),            # x: streamed per tile
            pl.BlockSpec((D_in, H), lambda i: (0, 0)),             # W1: VMEM-resident
            pl.BlockSpec((1, H), lambda i: (0, 0)),                # b1: VMEM-resident
            pl.BlockSpec((1, H), lambda i: (0, 0)),                # w2 row: VMEM-resident
            pl.BlockSpec(memory_space=pltpu.MemorySpace.SMEM),     # b2: scalar in SMEM
        ],
        out_specs=pl.BlockSpec((tb, 1), lambda i: (i, 0)),
        compiler_params=pltpu.CompilerParams(
            dimension_semantics=("parallel",)),
    )(x_p, w1, b1_row, w2_row, b2_sc)

    return out[:B]


def _torch_linear_init(key, fan_in, shape):
    # Deterministic stand-in for nn.Linear default init: U(-1/sqrt(fan_in), +1/sqrt(fan_in))
    bound = 1.0 / (fan_in ** 0.5)
    return jax.random.uniform(key, shape, jnp.float32, -bound, bound)


def _reference(x, w1, b1, w2, b2):
    return jnp.maximum(x @ w1 + b1, 0.0) @ w2 + b2


if __name__ == "__main__":
    # Shapes consistent with the module: input_size=32, layer1_size=128 (default)
    input_size, layer1_size = 32, 128

    key = jax.random.PRNGKey(0)
    kx, kw1, kb1, kw2, kb2, kx2 = jax.random.split(key, 6)

    w1 = _torch_linear_init(kw1, input_size, (input_size, layer1_size))
    b1 = _torch_linear_init(kb1, input_size, (layer1_size,))
    w2 = _torch_linear_init(kw2, layer1_size, (layer1_size, 1))
    b2 = _torch_linear_init(kb2, layer1_size, (1,))

    # Small batch: single-tile path.
    x_small = jax.random.normal(kx, (8, input_size), jnp.float32)
    logits_small = binary_mlp_1l_forward(x_small, w1, b1, w2, b2)
    jax.block_until_ready(logits_small)
    ref_small = _reference(x_small, w1, b1, w2, b2)
    assert logits_small.shape == (8, 1)
    assert jnp.allclose(logits_small, ref_small, atol=2e-2, rtol=2e-2)

    # Larger batch: exercises the tiled + zero-padded multi-grid-step path.
    x_big = jax.random.normal(kx2, (300, input_size), jnp.float32)
    logits_big = binary_mlp_1l_forward(x_big, w1, b1, w2, b2, block_b=128)
    jax.block_until_ready(logits_big)
    ref_big = _reference(x_big, w1, b1, w2, b2)
    assert logits_big.shape == (300, 1)
    assert jnp.allclose(logits_big, ref_big, atol=2e-2, rtol=2e-2)

    print("KERNEL_OK")
</pallas_src>

<mosaic_0001>
module attributes {stable_mosaic.version = 11 : i64} {
  func.func @_mlp_kernel(%arg0: i32, %arg1: memref<8x32xf32, #tpu.memory_space<vmem>>, %arg2: memref<32x128xf32, #tpu.memory_space<vmem>>, %arg3: memref<1x128xf32, #tpu.memory_space<vmem>>, %arg4: memref<1x128xf32, #tpu.memory_space<vmem>>, %arg5: memref<1xf32, #tpu.memory_space<smem>>, %arg6: memref<8x1xf32, #tpu.memory_space<vmem>>) attributes {dimension_semantics = [#tpu.dimension_semantics<parallel>], iteration_bounds = array<i64: 1>, scalar_prefetch = 0 : i64, scratch_operands = 0 : i64, tpu.core_type = #tpu.core_type<tc>, window_params = [{transform_indices = @transform_0, window_bounds = array<i64: 8, 32>}, {pipeline_mode = #tpu.pipeline_mode<synchronous>, transform_indices = @transform_1, window_bounds = array<i64: 32, 128>}, {pipeline_mode = #tpu.pipeline_mode<synchronous>, transform_indices = @transform_2, window_bounds = array<i64: 1, 128>}, {pipeline_mode = #tpu.pipeline_mode<synchronous>, transform_indices = @transform_3, window_bounds = array<i64: 1, 128>}, {transform_indices = @transform_4, window_bounds = array<i64: 1>}, {transform_indices = @transform_5, window_bounds = array<i64: 8, 1>}]} {
    %c0 = arith.constant 0 : index
    %c0_0 = arith.constant 0 : index
    %0 = vector.load %arg1[%c0, %c0_0] : memref<8x32xf32, #tpu.memory_space<vmem>>, vector<8x32xf32>
    %1 = arith.truncf %0 : vector<8x32xf32> to vector<8x32xbf16>
    %c0_1 = arith.constant 0 : index
    %c0_2 = arith.constant 0 : index
    %2 = vector.load %arg2[%c0_1, %c0_2] : memref<32x128xf32, #tpu.memory_space<vmem>>, vector<32x128xf32>
    %3 = arith.truncf %2 : vector<32x128xf32> to vector<32x128xbf16>
    %cst = arith.constant dense<0.000000e+00> : vector<8x128xf32>
    %4 = tpu.matmul %1, %3, %cst {dimension_numbers = #tpu.dot_dimension_numbers<[1], [0], [0], [1], [0, 0, 1, 1], [], []>} : vector<8x32xbf16>, vector<32x128xbf16>, vector<8x128xf32> -> vector<8x128xf32>
    %c0_3 = arith.constant 0 : index
    %c0_4 = arith.constant 0 : index
    %5 = vector.load %arg3[%c0_3, %c0_4] : memref<1x128xf32, #tpu.memory_space<vmem>>, vector<1x128xf32>
    %6 = vector.broadcast %5 : vector<1x128xf32> to vector<8x128xf32>
    %7 = arith.addf %4, %6 : vector<8x128xf32>
    %cst_5 = arith.constant 0.000000e+00 : f32
    %8 = vector.broadcast %cst_5 : f32 to vector<8x128xf32>
    %9 = arith.maximumf %7, %8 : vector<8x128xf32>
    %c0_6 = arith.constant 0 : index
    %c0_7 = arith.constant 0 : index
    %10 = vector.load %arg4[%c0_6, %c0_7] : memref<1x128xf32, #tpu.memory_space<vmem>>, vector<1x128xf32>
    %11 = vector.broadcast %10 : vector<1x128xf32> to vector<8x128xf32>
    %12 = arith.mulf %9, %11 : vector<8x128xf32>
    %cst_8 = arith.constant dense<0.000000e+00> : vector<8xf32>
    %13 = vector.multi_reduction <add>, %12, %cst_8 [1] : vector<8x128xf32> to vector<8xf32>
    %14 = vector.shape_cast %13 : vector<8xf32> to vector<8x1xf32>
    %c0_9 = arith.constant 0 : index
    %15 = memref.load %arg5[%c0_9] : memref<1xf32, #tpu.memory_space<smem>>
    %16 = vector.broadcast %15 : f32 to vector<8x1xf32>
    %17 = arith.addf %14, %16 : vector<8x1xf32>
    %c0_10 = arith.constant 0 : index
    %c0_11 = arith.constant 0 : index
    %18 = vector.load %arg6[%c0_10, %c0_11] : memref<8x1xf32, #tpu.memory_space<vmem>>, vector<8x1xf32>
    tpu.vector_store %arg6[%c0_10, %c0_11], %17 {strides = array<i32>} : memref<8x1xf32, #tpu.memory_space<vmem>>, vector<8x1xf32>,
    return
  }
  func.func @transform_0(%arg0: i32) -> (i32, i32) {
    %c0_i32 = arith.constant 0 : i32
    %c0_i32_0 = arith.constant 0 : i32
    return %arg0, %c0_i32 : i32, i32
  }
  func.func @transform_1(%arg0: i32) -> (i32, i32) {
    %c0_i32 = arith.constant 0 : i32
    %c0_i32_0 = arith.constant 0 : i32
    %c0_i32_1 = arith.constant 0 : i32
    return %c0_i32, %c0_i32_0 : i32, i32
  }
  func.func @transform_2(%arg0: i32) -> (i32, i32) {
    %c0_i32 = arith.constant 0 : i32
    %c0_i32_0 = arith.constant 0 : i32
    %c0_i32_1 = arith.constant 0 : i32
    return %c0_i32, %c0_i32_0 : i32, i32
  }
  func.func @transform_3(%arg0: i32) -> (i32, i32) {
    %c0_i32 = arith.constant 0 : i32
    %c0_i32_0 = arith.constant 0 : i32
    %c0_i32_1 = arith.constant 0 : i32
    return %c0_i32, %c0_i32_0 : i32, i32
  }
  func.func @transform_4(%arg0: i32) -> i32 {
    %c0_i32 = arith.constant 0 : i32
    %c0_i32_0 = arith.constant 0 : i32
    return %c0_i32 : i32
  }
  func.func @transform_5(%arg0: i32) -> (i32, i32) {
    %c0_i32 = arith.constant 0 : i32
    %c0_i32_0 = arith.constant 0 : i32
    return %arg0, %c0_i32 : i32, i32
  }
}

</mosaic_0001>

<bundles_post_ra>
// kernel: tpu_custom_call.1
= control target key start
LH: loop header
LB: loop body
LE: loop exit
PB: predicated region body
PF: predicated region fallthrough
CT: control target
= control target key end

     0   :  { %11 = vsyncpa [#allocation4], 0  ;;  %s211_s0 = inlined_call_operand.hbm [shape: f32[8,32], index: 0, kind: input, shape index: {}]   ;;  %s212_s1 = inlined_call_operand.hbm [shape: f32[32,128], index: 1, kind: input, shape index: {}]   ;;  %s213_s2 = inlined_call_operand.vmem [shape: f32[1,128], index: 2, kind: input, shape index: {}]   ;;  %s214_s3 = inlined_call_operand.vmem [shape: f32[1,128], index: 3, kind: input, shape index: {}]   ;;  %s215_s4 = inlined_call_operand.<no memory space> [shape: f32[1], index: 4, kind: input, shape index: {}]   ;;  %s216_s5 = inlined_call_operand.vmem [shape: f32[8,1], index: 5, kind: output, shape index: {}]  }
   0x1   :  { %s18_s20 = sshll.u32 %s211_s0, 4  ;;  %s19_s20 = int_to_ptr.hbm [resolvable:$true] %s18_s20 }
   0x2   :  { %12 = vsyncpa [#allocation6], 0  ;;  %s159_s21 = smov [#allocation3]   ;;  %s28_s25 = sshll.u32 %s212_s1, 4  ;;  %s29_s25 = int_to_ptr.hbm [resolvable:$true] %s28_s25 }
   0x3   :  { %s20_s22 = sshll.u32 %s159_s21, 4  ;;  %s160_s26 = smov [#allocation5]   ;;  %s21_s22 = int_to_ptr.vmem [resolvable:$true] %s20_s22 }
   0x4   :  { %23 = dma.hbm_to_vmem [thread:$0]  %s19_s20, 128, %s21_s22, [#allocation4]  }
   0x5   :  { %s30_s27 = sshll.u32 %s160_s26, 4  ;;  %s161_s28 = smov 128   ;;  %s31_s27 = int_to_ptr.vmem [resolvable:$true] %s30_s27 }
   0x6   :  { %s162_s29 = smov 8  }
   0x7   :  { %36 = dma.hbm_to_vmem [thread:$0]  %s29_s25, 512, %s31_s27, [#allocation6], %s161_s28, %s161_s28, %s162_s29  }
   0x8   :  { %155 = dma.done.wait [#allocation4], 128  }
   0x9   :  { %156 = vsyncadd [#allocation4], 4294967168 }
   0xa   :  { %157 = dma.done.wait [#allocation6], 512  }
   0xb   :  { %158 = vsyncadd [#allocation6], 4294966784  ;;  %v56_v0 = vld [vmem:[#allocation5 + $0x10] sm:$0xff]  ;;  %v57_v1 = vld [vmem:[#allocation5 + $0x18] sm:$0xff]  ;;  %vm64_vm0 = vcmask 261120   ;;  %v90_v15 = vstv %s215_s4  ;;  %vm92_vm1 = vcmask 7168  }
   0xc   :  { %v54_v2 = vld [vmem:[#allocation5] sm:$0xff]  ;;  %v59_v3 = vpack.c.bf16 %v57_v1, %v56_v0  ;;  %v55_v4 = vld [vmem:[#allocation5 + $0x8] sm:$0xff]  ;;  %v52_v6 = vld [vmem:[#allocation3] sm:$0xff] }
   0xd   :  { %v58_v5 = vpack.c.bf16 %v55_v4, %v54_v2  ;;  %v53_v7 = vpack.c.bf16 %v52_v6, %v52_v6  ;;  %v105_v8 = vld [vmem:[%s213_s2] ss:$0 sm:$0xff] }
   0xe   :  { %74 = vmatpush.bf16.msra.mxu0 %v59_v3  ;;  %v106_v11 = vld [vmem:[%s214_s3] ss:$0 sm:$0xff] }
  0x12   :  { %75 = vmatpush.bf16.msra.mxu0 %v58_v5 }
  0x15   :  { %100 = vmatmul.msk.bf16.vlgmr.msra.gmra.mxu0 %vm64_vm0, %v53_v7 }
  0x92   :  { %v77_v9 = vpop.f32.mrf.mxu0 }
  0x93   :  { %v78_v10 = vadd.f32 %v105_v8, %v77_v9 }
  0x95   :  { %v81_v12 = vmax.f32 %v78_v10, 0.0 }
  0x97   :  { %v86_v13 = vmul.f32 %v106_v11, %v81_v12 }
  0x99   :  { %87 = vadd.xlane.f32.xlu0 %v86_v13 }
  0x9a   :  { %v79_v14 = vpop.f32.mrf.mxu0 }
 0x10c   :  { %v88_v16 = vpop.xlane.xlu0 %87 }
 0x10d   :  { %v91_v17 = vadd.f32 %v90_v15, %v88_v16 }
 0x10f   :  { %93 = vst.msk [vmem:[%s216_s5] sm:$0xff] %vm92_vm1, %v91_v17 }
 0x110   :  { %98 = vsyncpa [#allocation4], 1 }
 0x111   :  { %99 = vsyncpa [#allocation6], 1 }

</bundles_post_ra>
